<compile_context>
chip_gen: v5e
topology: v5e:2x2
jax: 0.10.0
libtpu: 0.0.40
codegen_flags: <defaults>
</compile_context>

<pallas_src>
import functools

import jax
import jax.numpy as jnp
from jax import lax
from jax.experimental import pallas as pl
from jax.experimental.pallas import tpu as pltpu

_VMEM_LIMIT_CACHE = None


def _vmem_limit_bytes():
    """~3/4 of physical VMEM (≈48 MiB on v7x, ≈96 MiB on v5e/v6e)."""
    global _VMEM_LIMIT_CACHE
    if _VMEM_LIMIT_CACHE is None:
        cap = 64 * 1024 * 1024
        try:
            cap = int(pltpu.get_tpu_info().vmem_capacity_bytes)
        except Exception:
            pass
        _VMEM_LIMIT_CACHE = (cap * 3) // 4
    return _VMEM_LIMIT_CACHE


def _pick_tile(n, target):
    """Largest tile <= target that divides n and is a multiple of 8 (sublane
    rule); falls back to the full dim, which is always a legal block size."""
    if n <= target:
        return n
    for t in range(min(target, n), 7, -1):
        if n % t == 0 and t % 8 == 0:
            return t
    return n


# ------------------- kernel 1: fused QKV projection, head-major out ----------
def _qkv_heads_kernel(x_ref, w_ref, b_ref, q_ref, k_ref, v_ref, *,
                      num_heads, head_dim):
    # x_ref: (1, tm, C) bf16 ; w_ref: (C, 3C) bf16 (resident) ; b_ref: (1, 3C) f32
    # q/k/v_ref: (1, H, tm, Dh) bf16 -- written head-major so the attention
    # kernel needs no wrapper-side transpose.
    C = num_heads * head_dim
    acc = jnp.dot(x_ref[0], w_ref[...], preferred_element_type=jnp.float32)
    acc = acc + b_ref[...]                                     # (tm, 3C) f32
    # Column order of the fused 3C output is (qkv, head, head_dim), matching
    # torch's reshape(B, N, 3, H, Dh).
    for s, out_ref in enumerate((q_ref, k_ref, v_ref)):
        for h in range(num_heads):
            c0 = s * C + h * head_dim
            out_ref[0, h] = acc[:, c0:c0 + head_dim].astype(out_ref.dtype)


def _qkv_heads(x, qkv_w, qkv_b2, *, num_heads, tm):
    B, N, C = x.shape
    Dh = C // num_heads
    out = jax.ShapeDtypeStruct((B, num_heads, N, Dh), jnp.bfloat16)
    hspec = pl.BlockSpec((1, num_heads, tm, Dh), lambda b, ni: (b, 0, ni, 0))
    return pl.pallas_call(
        functools.partial(_qkv_heads_kernel, num_heads=num_heads, head_dim=Dh),
        out_shape=(out, out, out),
        grid_spec=pltpu.PrefetchScalarGridSpec(
            num_scalar_prefetch=0,
            grid=(B, N // tm),
            in_specs=[
                pl.BlockSpec((1, tm, C), lambda b, ni: (b, ni, 0)),
                pl.BlockSpec((C, 3 * C), lambda b, ni: (0, 0)),   # resident weight
                pl.BlockSpec((1, 3 * C), lambda b, ni: (0, 0)),   # resident bias
            ],
            out_specs=[hspec, hspec, hspec],
        ),
        compiler_params=pltpu.CompilerParams(
            dimension_semantics=("parallel", "parallel"),
            vmem_limit_bytes=_vmem_limit_bytes()),
    )(x, qkv_w, qkv_b2)


# --------- kernel 2: attention (K/V resident per batch) + fused projection ---
def _attn_proj_kernel(q_ref, k_ref, v_ref, w_ref, b_ref, o_ref, *,
                      num_heads, head_dim):
    # q_ref: (1, H, tq, Dh) bf16 (softmax scale pre-folded into q)
    # k_ref/v_ref: (1, H, N, Dh) bf16 -- resident per batch (read once per b)
    # w_ref: (C, C) bf16 proj weight (resident) ; b_ref: (1, C) f32
    # o_ref: (1, tq, C) -- final projected output, lane-dense store.
    H, Dh = num_heads, head_dim
    C = H * Dh
    tq = q_ref.shape[2]
    acc = jnp.zeros((tq, C), dtype=jnp.float32)
    for h in range(H):
        q_h = q_ref[0, h]                                     # (tq, Dh) bf16
        k_h = k_ref[0, h]                                     # (N, Dh)  bf16
        v_h = v_ref[0, h]                                     # (N, Dh)  bf16
        # scores = q_h @ k_h^T, f32 accumulation on the MXU.
        s = lax.dot_general(q_h, k_h, (((1,), (1,)), ((), ())),
                            preferred_element_type=jnp.float32)   # (tq, N)
        m = jnp.max(s, axis=-1, keepdims=True)
        p = jnp.exp(s - m)
        l = jnp.sum(p, axis=-1, keepdims=True)
        # attn_drop has p=0.0 -> identity (eval semantics)
        o_h = jnp.dot(p.astype(v_h.dtype), v_h,
                      preferred_element_type=jnp.float32)          # (tq, Dh)
        o_h = o_h * pl.reciprocal(l, approx=True)                  # EUP slot
        # Fused output projection: y = sum_h o_h @ W_proj[h*Dh:(h+1)*Dh, :],
        # so the merged attention output never touches HBM.
        w_h = w_ref[pl.ds(h * Dh, Dh), :]                          # (Dh, C)
        acc = acc + jnp.dot(o_h.astype(jnp.bfloat16), w_h,
                            preferred_element_type=jnp.float32)
    o_ref[0] = (acc + b_ref[...]).astype(o_ref.dtype)
    # proj_drop has p=0.0 -> identity (eval semantics)


def _attention_proj(q, k, v, proj_w, proj_b2, *, tq, out_dtype):
    B, H, N, Dh = q.shape
    C = H * Dh
    return pl.pallas_call(
        functools.partial(_attn_proj_kernel, num_heads=H, head_dim=Dh),
        out_shape=jax.ShapeDtypeStruct((B, N, C), out_dtype),
        grid_spec=pltpu.PrefetchScalarGridSpec(
            num_scalar_prefetch=0,
            grid=(B, N // tq),
            in_specs=[
                pl.BlockSpec((1, H, tq, Dh), lambda b, qi: (b, 0, qi, 0)),
                pl.BlockSpec((1, H, N, Dh), lambda b, qi: (b, 0, 0, 0)),  # K resident
                pl.BlockSpec((1, H, N, Dh), lambda b, qi: (b, 0, 0, 0)),  # V resident
                pl.BlockSpec((C, C), lambda b, qi: (0, 0)),               # proj weight
                pl.BlockSpec((1, C), lambda b, qi: (0, 0)),               # proj bias
            ],
            out_specs=pl.BlockSpec((1, tq, C), lambda b, qi: (b, qi, 0)),
        ),
        compiler_params=pltpu.CompilerParams(
            dimension_semantics=("parallel", "parallel"),
            vmem_limit_bytes=_vmem_limit_bytes()),
    )(q, k, v, proj_w, proj_b2)


# --------------------------------- wrapper -----------------------------------
def attention_pallas(x, qkv_w, qkv_b, proj_w, proj_b, *, num_heads):
    B, N, C = x.shape
    assert C % num_heads == 0
    Dh = C // num_heads
    scale = Dh ** (-0.5)
    out_dtype = x.dtype

    # Fold the softmax scale into the q columns (first C columns) of the QKV
    # weight/bias, wrapper-side and in f32:  (x @ (Wq*s) + bq*s) = s * q.
    qkv_w_f = qkv_w.astype(jnp.float32).at[:, :C].multiply(scale)
    qkv_b_f = qkv_b.astype(jnp.float32).at[:C].multiply(scale)

    # bf16 MXU operands; accumulation stays f32 inside the kernels.
    xb = x.astype(jnp.bfloat16)
    qkv_wb = qkv_w_f.astype(jnp.bfloat16)
    qkv_b2 = qkv_b_f.reshape(1, 3 * C)                    # f32
    proj_wb = proj_w.astype(jnp.bfloat16)
    proj_b2 = proj_b.reshape(1, C).astype(jnp.float32)

    tm = _pick_tile(N, 512)    # QKV projection row tile (mem-bound -> large)
    tq = _pick_tile(N, 256)    # attention q-row tile

    # 1) Fused QKV projection -> q/k/v already head-major [B, H, N, Dh].
    q, k, v = _qkv_heads(xb, qkv_wb, qkv_b2, num_heads=num_heads, tm=tm)

    # 2) Attention (K/V resident per batch) + fused output projection -> [B,N,C].
    y = _attention_proj(q, k, v, proj_wb, proj_b2, tq=tq, out_dtype=out_dtype)
    return y


def attention_reference(x, qkv_w, qkv_b, proj_w, proj_b, *, num_heads):
    """Pure-JAX fp32 reference mirroring the PyTorch forward."""
    B, N, C = x.shape
    Dh = C // num_heads
    scale = Dh ** (-0.5)
    qkv = jnp.einsum('bnc,cd->bnd', x, qkv_w) + qkv_b            # [B, N, 3C]
    qkv = qkv.reshape(B, N, 3, num_heads, Dh)
    qkv = jnp.transpose(qkv, (2, 0, 3, 1, 4))                    # [3, B, H, N, Dh]
    q, k, v = qkv[0], qkv[1], qkv[2]
    attn = jnp.einsum('bhnd,bhmd->bhnm', q, k) * scale
    attn = jax.nn.softmax(attn, axis=-1)
    out = jnp.einsum('bhnm,bhmd->bhnd', attn, v)
    out = jnp.transpose(out, (0, 2, 1, 3)).reshape(B, N, C)
    return jnp.einsum('bnc,cd->bnd', out, proj_w) + proj_b


if __name__ == "__main__":
    B, N, C = 2, 8, 32
    num_heads = 8

    key = jax.random.PRNGKey(0)
    kx, kw1, kb1, kw2, kb2 = jax.random.split(key, 5)

    x = jax.random.normal(kx, (B, N, C), dtype=jnp.float32)
    # Deterministic parameter init (shapes from Attention.__init__, dim=C).
    qkv_w = jax.random.normal(kw1, (C, 3 * C), dtype=jnp.float32) * 0.05
    qkv_b = jax.random.normal(kb1, (3 * C,), dtype=jnp.float32) * 0.05
    proj_w = jax.random.normal(kw2, (C, C), dtype=jnp.float32) * 0.05
    proj_b = jax.random.normal(kb2, (C,), dtype=jnp.float32) * 0.05

    out = attention_pallas(x, qkv_w, qkv_b, proj_w, proj_b, num_heads=num_heads)
    out = jax.block_until_ready(out)

    ref = attention_reference(x, qkv_w, qkv_b, proj_w, proj_b,
                              num_heads=num_heads)
    assert out.shape == (B, N, C)
    # bf16 MXU operands (f32 accumulation) -> compare with bf16-level tolerance.
    assert jnp.allclose(out, ref, atol=2e-2, rtol=2e-2), "mismatch vs reference"

    print("KERNEL_OK")
</pallas_src>

<mosaic_0001>
module attributes {stable_mosaic.version = 11 : i64} {
  func.func @_qkv_heads_kernel(%arg0: i32, %arg1: i32, %arg2: memref<1x8x32xbf16, #tpu.memory_space<vmem>>, %arg3: memref<32x96xbf16, #tpu.memory_space<vmem>>, %arg4: memref<1x96xf32, #tpu.memory_space<vmem>>, %arg5: memref<1x8x8x4xbf16, #tpu.memory_space<vmem>>, %arg6: memref<1x8x8x4xbf16, #tpu.memory_space<vmem>>, %arg7: memref<1x8x8x4xbf16, #tpu.memory_space<vmem>>) attributes {dimension_semantics = [#tpu.dimension_semantics<parallel>, #tpu.dimension_semantics<parallel>], iteration_bounds = array<i64: 2, 1>, scalar_prefetch = 0 : i64, scratch_operands = 0 : i64, tpu.core_type = #tpu.core_type<tc>, window_params = [{transform_indices = @transform_0, window_bounds = array<i64: 1, 8, 32>}, {pipeline_mode = #tpu.pipeline_mode<synchronous>, transform_indices = @transform_1, window_bounds = array<i64: 32, 96>}, {pipeline_mode = #tpu.pipeline_mode<synchronous>, transform_indices = @transform_2, window_bounds = array<i64: 1, 96>}, {transform_indices = @transform_3, window_bounds = array<i64: 1, 8, 8, 4>}, {transform_indices = @transform_4, window_bounds = array<i64: 1, 8, 8, 4>}, {transform_indices = @transform_5, window_bounds = array<i64: 1, 8, 8, 4>}]} {
    %c0 = arith.constant 0 : index
    %c0_0 = arith.constant 0 : index
    %c0_1 = arith.constant 0 : index
    %0 = vector.load %arg2[%c0, %c0_0, %c0_1] : memref<1x8x32xbf16, #tpu.memory_space<vmem>>, vector<1x8x32xbf16>
    %1 = vector.shape_cast %0 : vector<1x8x32xbf16> to vector<8x32xbf16>
    %c0_2 = arith.constant 0 : index
    %c0_3 = arith.constant 0 : index
    %2 = vector.load %arg3[%c0_2, %c0_3] : memref<32x96xbf16, #tpu.memory_space<vmem>>, vector<32x96xbf16>
    %cst = arith.constant dense<0.000000e+00> : vector<8x96xf32>
    %3 = tpu.matmul %1, %2, %cst {dimension_numbers = #tpu.dot_dimension_numbers<[1], [0], [0], [1], [0, 0, 1, 1], [], []>} : vector<8x32xbf16>, vector<32x96xbf16>, vector<8x96xf32> -> vector<8x96xf32>
    %c0_4 = arith.constant 0 : index
    %c0_5 = arith.constant 0 : index
    %4 = vector.load %arg4[%c0_4, %c0_5] : memref<1x96xf32, #tpu.memory_space<vmem>>, vector<1x96xf32>
    %5 = vector.broadcast %4 : vector<1x96xf32> to vector<8x96xf32>
    %6 = arith.addf %3, %5 : vector<8x96xf32>
    %7 = vector.extract_strided_slice %6 {offsets = [0, 0], sizes = [8, 4], strides = [1, 1]} : vector<8x96xf32> to vector<8x4xf32>
    %8 = arith.truncf %7 : vector<8x4xf32> to vector<8x4xbf16>
    %c0_6 = arith.constant 0 : index
    %c0_7 = arith.constant 0 : index
    %c0_8 = arith.constant 0 : index
    %c0_9 = arith.constant 0 : index
    %9 = vector.load %arg5[%c0_6, %c0_7, %c0_8, %c0_9] : memref<1x8x8x4xbf16, #tpu.memory_space<vmem>>, vector<1x1x8x4xbf16>
    %10 = vector.shape_cast %9 : vector<1x1x8x4xbf16> to vector<8x4xbf16>
    %11 = vector.shape_cast %8 : vector<8x4xbf16> to vector<1x1x8x4xbf16>
    tpu.vector_store %arg5[%c0_6, %c0_7, %c0_8, %c0_9], %11 {strides = array<i32>} : memref<1x8x8x4xbf16, #tpu.memory_space<vmem>>, vector<1x1x8x4xbf16>,
    %12 = vector.extract_strided_slice %6 {offsets = [0, 4], sizes = [8, 4], strides = [1, 1]} : vector<8x96xf32> to vector<8x4xf32>
    %13 = arith.truncf %12 : vector<8x4xf32> to vector<8x4xbf16>
    %c0_10 = arith.constant 0 : index
    %c1 = arith.constant 1 : index
    %c0_11 = arith.constant 0 : index
    %c0_12 = arith.constant 0 : index
    %14 = vector.load %arg5[%c0_10, %c1, %c0_11, %c0_12] : memref<1x8x8x4xbf16, #tpu.memory_space<vmem>>, vector<1x1x8x4xbf16>
    %15 = vector.shape_cast %14 : vector<1x1x8x4xbf16> to vector<8x4xbf16>
    %16 = vector.shape_cast %13 : vector<8x4xbf16> to vector<1x1x8x4xbf16>
    tpu.vector_store %arg5[%c0_10, %c1, %c0_11, %c0_12], %16 {strides = array<i32>} : memref<1x8x8x4xbf16, #tpu.memory_space<vmem>>, vector<1x1x8x4xbf16>,
    %17 = vector.extract_strided_slice %6 {offsets = [0, 8], sizes = [8, 4], strides = [1, 1]} : vector<8x96xf32> to vector<8x4xf32>
    %18 = arith.truncf %17 : vector<8x4xf32> to vector<8x4xbf16>
    %c0_13 = arith.constant 0 : index
    %c2 = arith.constant 2 : index
    %c0_14 = arith.constant 0 : index
    %c0_15 = arith.constant 0 : index
    %19 = vector.load %arg5[%c0_13, %c2, %c0_14, %c0_15] : memref<1x8x8x4xbf16, #tpu.memory_space<vmem>>, vector<1x1x8x4xbf16>
    %20 = vector.shape_cast %19 : vector<1x1x8x4xbf16> to vector<8x4xbf16>
    %21 = vector.shape_cast %18 : vector<8x4xbf16> to vector<1x1x8x4xbf16>
    tpu.vector_store %arg5[%c0_13, %c2, %c0_14, %c0_15], %21 {strides = array<i32>} : memref<1x8x8x4xbf16, #tpu.memory_space<vmem>>, vector<1x1x8x4xbf16>,
    %22 = vector.extract_strided_slice %6 {offsets = [0, 12], sizes = [8, 4], strides = [1, 1]} : vector<8x96xf32> to vector<8x4xf32>
    %23 = arith.truncf %22 : vector<8x4xf32> to vector<8x4xbf16>
    %c0_16 = arith.constant 0 : index
    %c3 = arith.constant 3 : index
    %c0_17 = arith.constant 0 : index
    %c0_18 = arith.constant 0 : index
    %24 = vector.load %arg5[%c0_16, %c3, %c0_17, %c0_18] : memref<1x8x8x4xbf16, #tpu.memory_space<vmem>>, vector<1x1x8x4xbf16>
    %25 = vector.shape_cast %24 : vector<1x1x8x4xbf16> to vector<8x4xbf16>
    %26 = vector.shape_cast %23 : vector<8x4xbf16> to vector<1x1x8x4xbf16>
    tpu.vector_store %arg5[%c0_16, %c3, %c0_17, %c0_18], %26 {strides = array<i32>} : memref<1x8x8x4xbf16, #tpu.memory_space<vmem>>, vector<1x1x8x4xbf16>,
    %27 = vector.extract_strided_slice %6 {offsets = [0, 16], sizes = [8, 4], strides = [1, 1]} : vector<8x96xf32> to vector<8x4xf32>
    %28 = arith.truncf %27 : vector<8x4xf32> to vector<8x4xbf16>
    %c0_19 = arith.constant 0 : index
    %c4 = arith.constant 4 : index
    %c0_20 = arith.constant 0 : index
    %c0_21 = arith.constant 0 : index
    %29 = vector.load %arg5[%c0_19, %c4, %c0_20, %c0_21] : memref<1x8x8x4xbf16, #tpu.memory_space<vmem>>, vector<1x1x8x4xbf16>
    %30 = vector.shape_cast %29 : vector<1x1x8x4xbf16> to vector<8x4xbf16>
    %31 = vector.shape_cast %28 : vector<8x4xbf16> to vector<1x1x8x4xbf16>
    tpu.vector_store %arg5[%c0_19, %c4, %c0_20, %c0_21], %31 {strides = array<i32>} : memref<1x8x8x4xbf16, #tpu.memory_space<vmem>>, vector<1x1x8x4xbf16>,
    %32 = vector.extract_strided_slice %6 {offsets = [0, 20], sizes = [8, 4], strides = [1, 1]} : vector<8x96xf32> to vector<8x4xf32>
    %33 = arith.truncf %32 : vector<8x4xf32> to vector<8x4xbf16>
    %c0_22 = arith.constant 0 : index
    %c5 = arith.constant 5 : index
    %c0_23 = arith.constant 0 : index
    %c0_24 = arith.constant 0 : index
    %34 = vector.load %arg5[%c0_22, %c5, %c0_23, %c0_24] : memref<1x8x8x4xbf16, #tpu.memory_space<vmem>>, vector<1x1x8x4xbf16>
    %35 = vector.shape_cast %34 : vector<1x1x8x4xbf16> to vector<8x4xbf16>
    %36 = vector.shape_cast %33 : vector<8x4xbf16> to vector<1x1x8x4xbf16>
    tpu.vector_store %arg5[%c0_22, %c5, %c0_23, %c0_24], %36 {strides = array<i32>} : memref<1x8x8x4xbf16, #tpu.memory_space<vmem>>, vector<1x1x8x4xbf16>,
    %37 = vector.extract_strided_slice %6 {offsets = [0, 24], sizes = [8, 4], strides = [1, 1]} : vector<8x96xf32> to vector<8x4xf32>
    %38 = arith.truncf %37 : vector<8x4xf32> to vector<8x4xbf16>
    %c0_25 = arith.constant 0 : index
    %c6 = arith.constant 6 : index
    %c0_26 = arith.constant 0 : index
    %c0_27 = arith.constant 0 : index
    %39 = vector.load %arg5[%c0_25, %c6, %c0_26, %c0_27] : memref<1x8x8x4xbf16, #tpu.memory_space<vmem>>, vector<1x1x8x4xbf16>
    %40 = vector.shape_cast %39 : vector<1x1x8x4xbf16> to vector<8x4xbf16>
    %41 = vector.shape_cast %38 : vector<8x4xbf16> to vector<1x1x8x4xbf16>
    tpu.vector_store %arg5[%c0_25, %c6, %c0_26, %c0_27], %41 {strides = array<i32>} : memref<1x8x8x4xbf16, #tpu.memory_space<vmem>>, vector<1x1x8x4xbf16>,
    %42 = vector.extract_strided_slice %6 {offsets = [0, 28], sizes = [8, 4], strides = [1, 1]} : vector<8x96xf32> to vector<8x4xf32>
    %43 = arith.truncf %42 : vector<8x4xf32> to vector<8x4xbf16>
    %c0_28 = arith.constant 0 : index
    %c7 = arith.constant 7 : index
    %c0_29 = arith.constant 0 : index
    %c0_30 = arith.constant 0 : index
    %44 = vector.load %arg5[%c0_28, %c7, %c0_29, %c0_30] : memref<1x8x8x4xbf16, #tpu.memory_space<vmem>>, vector<1x1x8x4xbf16>
    %45 = vector.shape_cast %44 : vector<1x1x8x4xbf16> to vector<8x4xbf16>
    %46 = vector.shape_cast %43 : vector<8x4xbf16> to vector<1x1x8x4xbf16>
    tpu.vector_store %arg5[%c0_28, %c7, %c0_29, %c0_30], %46 {strides = array<i32>} : memref<1x8x8x4xbf16, #tpu.memory_space<vmem>>, vector<1x1x8x4xbf16>,
    %47 = vector.extract_strided_slice %6 {offsets = [0, 32], sizes = [8, 4], strides = [1, 1]} : vector<8x96xf32> to vector<8x4xf32>
    %48 = arith.truncf %47 : vector<8x4xf32> to vector<8x4xbf16>
    %c0_31 = arith.constant 0 : index
    %c0_32 = arith.constant 0 : index
    %c0_33 = arith.constant 0 : index
    %c0_34 = arith.constant 0 : index
    %49 = vector.load %arg6[%c0_31, %c0_32, %c0_33, %c0_34] : memref<1x8x8x4xbf16, #tpu.memory_space<vmem>>, vector<1x1x8x4xbf16>
    %50 = vector.shape_cast %49 : vector<1x1x8x4xbf16> to vector<8x4xbf16>
    %51 = vector.shape_cast %48 : vector<8x4xbf16> to vector<1x1x8x4xbf16>
    tpu.vector_store %arg6[%c0_31, %c0_32, %c0_33, %c0_34], %51 {strides = array<i32>} : memref<1x8x8x4xbf16, #tpu.memory_space<vmem>>, vector<1x1x8x4xbf16>,
    %52 = vector.extract_strided_slice %6 {offsets = [0, 36], sizes = [8, 4], strides = [1, 1]} : vector<8x96xf32> to vector<8x4xf32>
    %53 = arith.truncf %52 : vector<8x4xf32> to vector<8x4xbf16>
    %c0_35 = arith.constant 0 : index
    %c1_36 = arith.constant 1 : index
    %c0_37 = arith.constant 0 : index
    %c0_38 = arith.constant 0 : index
    %54 = vector.load %arg6[%c0_35, %c1_36, %c0_37, %c0_38] : memref<1x8x8x4xbf16, #tpu.memory_space<vmem>>, vector<1x1x8x4xbf16>
    %55 = vector.shape_cast %54 : vector<1x1x8x4xbf16> to vector<8x4xbf16>
    %56 = vector.shape_cast %53 : vector<8x4xbf16> to vector<1x1x8x4xbf16>
    tpu.vector_store %arg6[%c0_35, %c1_36, %c0_37, %c0_38], %56 {strides = array<i32>} : memref<1x8x8x4xbf16, #tpu.memory_space<vmem>>, vector<1x1x8x4xbf16>,
    %57 = vector.extract_strided_slice %6 {offsets = [0, 40], sizes = [8, 4], strides = [1, 1]} : vector<8x96xf32> to vector<8x4xf32>
    %58 = arith.truncf %57 : vector<8x4xf32> to vector<8x4xbf16>
    %c0_39 = arith.constant 0 : index
    %c2_40 = arith.constant 2 : index
    %c0_41 = arith.constant 0 : index
    %c0_42 = arith.constant 0 : index
    %59 = vector.load %arg6[%c0_39, %c2_40, %c0_41, %c0_42] : memref<1x8x8x4xbf16, #tpu.memory_space<vmem>>, vector<1x1x8x4xbf16>
    %60 = vector.shape_cast %59 : vector<1x1x8x4xbf16> to vector<8x4xbf16>
    %61 = vector.shape_cast %58 : vector<8x4xbf16> to vector<1x1x8x4xbf16>
    tpu.vector_store %arg6[%c0_39, %c2_40, %c0_41, %c0_42], %61 {strides = array<i32>} : memref<1x8x8x4xbf16, #tpu.memory_space<vmem>>, vector<1x1x8x4xbf16>,
    %62 = vector.extract_strided_slice %6 {offsets = [0, 44], sizes = [8, 4], strides = [1, 1]} : vector<8x96xf32> to vector<8x4xf32>
    %63 = arith.truncf %62 : vector<8x4xf32> to vector<8x4xbf16>
    %c0_43 = arith.constant 0 : index
    %c3_44 = arith.constant 3 : index
    %c0_45 = arith.constant 0 : index
    %c0_46 = arith.constant 0 : index
    %64 = vector.load %arg6[%c0_43, %c3_44, %c0_45, %c0_46] : memref<1x8x8x4xbf16, #tpu.memory_space<vmem>>, vector<1x1x8x4xbf16>
    %65 = vector.shape_cast %64 : vector<1x1x8x4xbf16> to vector<8x4xbf16>
    %66 = vector.shape_cast %63 : vector<8x4xbf16> to vector<1x1x8x4xbf16>
    tpu.vector_store %arg6[%c0_43, %c3_44, %c0_45, %c0_46], %66 {strides = array<i32>} : memref<1x8x8x4xbf16, #tpu.memory_space<vmem>>, vector<1x1x8x4xbf16>,
    %67 = vector.extract_strided_slice %6 {offsets = [0, 48], sizes = [8, 4], strides = [1, 1]} : vector<8x96xf32> to vector<8x4xf32>
    %68 = arith.truncf %67 : vector<8x4xf32> to vector<8x4xbf16>
    %c0_47 = arith.constant 0 : index
    %c4_48 = arith.constant 4 : index
    %c0_49 = arith.constant 0 : index
    %c0_50 = arith.constant 0 : index
    %69 = vector.load %arg6[%c0_47, %c4_48, %c0_49, %c0_50] : memref<1x8x8x4xbf16, #tpu.memory_space<vmem>>, vector<1x1x8x4xbf16>
    %70 = vector.shape_cast %69 : vector<1x1x8x4xbf16> to vector<8x4xbf16>
    %71 = vector.shape_cast %68 : vector<8x4xbf16> to vector<1x1x8x4xbf16>
    tpu.vector_store %arg6[%c0_47, %c4_48, %c0_49, %c0_50], %71 {strides = array<i32>} : memref<1x8x8x4xbf16, #tpu.memory_space<vmem>>, vector<1x1x8x4xbf16>,
    %72 = vector.extract_strided_slice %6 {offsets = [0, 52], sizes = [8, 4], strides = [1, 1]} : vector<8x96xf32> to vector<8x4xf32>
    %73 = arith.truncf %72 : vector<8x4xf32> to vector<8x4xbf16>
    %c0_51 = arith.constant 0 : index
    %c5_52 = arith.constant 5 : index
    %c0_53 = arith.constant 0 : index
    %c0_54 = arith.constant 0 : index
    %74 = vector.load %arg6[%c0_51, %c5_52, %c0_53, %c0_54] : memref<1x8x8x4xbf16, #tpu.memory_space<vmem>>, vector<1x1x8x4xbf16>
    %75 = vector.shape_cast %74 : vector<1x1x8x4xbf16> to vector<8x4xbf16>
    %76 = vector.shape_cast %73 : vector<8x4xbf16> to vector<1x1x8x4xbf16>
    tpu.vector_store %arg6[%c0_51, %c5_52, %c0_53, %c0_54], %76 {strides = array<i32>} : memref<1x8x8x4xbf16, #tpu.memory_space<vmem>>, vector<1x1x8x4xbf16>,
    %77 = vector.extract_strided_slice %6 {offsets = [0, 56], sizes = [8, 4], strides = [1, 1]} : vector<8x96xf32> to vector<8x4xf32>
    %78 = arith.truncf %77 : vector<8x4xf32> to vector<8x4xbf16>
    %c0_55 = arith.constant 0 : index
    %c6_56 = arith.constant 6 : index
    %c0_57 = arith.constant 0 : index
    %c0_58 = arith.constant 0 : index
    %79 = vector.load %arg6[%c0_55, %c6_56, %c0_57, %c0_58] : memref<1x8x8x4xbf16, #tpu.memory_space<vmem>>, vector<1x1x8x4xbf16>
    %80 = vector.shape_cast %79 : vector<1x1x8x4xbf16> to vector<8x4xbf16>
    %81 = vector.shape_cast %78 : vector<8x4xbf16> to vector<1x1x8x4xbf16>
    tpu.vector_store %arg6[%c0_55, %c6_56, %c0_57, %c0_58], %81 {strides = array<i32>} : memref<1x8x8x4xbf16, #tpu.memory_space<vmem>>, vector<1x1x8x4xbf16>,
    %82 = vector.extract_strided_slice %6 {offsets = [0, 60], sizes = [8, 4], strides = [1, 1]} : vector<8x96xf32> to vector<8x4xf32>
    %83 = arith.truncf %82 : vector<8x4xf32> to vector<8x4xbf16>
    %c0_59 = arith.constant 0 : index
    %c7_60 = arith.constant 7 : index
    %c0_61 = arith.constant 0 : index
    %c0_62 = arith.constant 0 : index
    %84 = vector.load %arg6[%c0_59, %c7_60, %c0_61, %c0_62] : memref<1x8x8x4xbf16, #tpu.memory_space<vmem>>, vector<1x1x8x4xbf16>
    %85 = vector.shape_cast %84 : vector<1x1x8x4xbf16> to vector<8x4xbf16>
    %86 = vector.shape_cast %83 : vector<8x4xbf16> to vector<1x1x8x4xbf16>
    tpu.vector_store %arg6[%c0_59, %c7_60, %c0_61, %c0_62], %86 {strides = array<i32>} : memref<1x8x8x4xbf16, #tpu.memory_space<vmem>>, vector<1x1x8x4xbf16>,
    %87 = vector.extract_strided_slice %6 {offsets = [0, 64], sizes = [8, 4], strides = [1, 1]} : vector<8x96xf32> to vector<8x4xf32>
    %88 = arith.truncf %87 : vector<8x4xf32> to vector<8x4xbf16>
    %c0_63 = arith.constant 0 : index
    %c0_64 = arith.constant 0 : index
    %c0_65 = arith.constant 0 : index
    %c0_66 = arith.constant 0 : index
    %89 = vector.load %arg7[%c0_63, %c0_64, %c0_65, %c0_66] : memref<1x8x8x4xbf16, #tpu.memory_space<vmem>>, vector<1x1x8x4xbf16>
    %90 = vector.shape_cast %89 : vector<1x1x8x4xbf16> to vector<8x4xbf16>
    %91 = vector.shape_cast %88 : vector<8x4xbf16> to vector<1x1x8x4xbf16>
    tpu.vector_store %arg7[%c0_63, %c0_64, %c0_65, %c0_66], %91 {strides = array<i32>} : memref<1x8x8x4xbf16, #tpu.memory_space<vmem>>, vector<1x1x8x4xbf16>,
    %92 = vector.extract_strided_slice %6 {offsets = [0, 68], sizes = [8, 4], strides = [1, 1]} : vector<8x96xf32> to vector<8x4xf32>
    %93 = arith.truncf %92 : vector<8x4xf32> to vector<8x4xbf16>
    %c0_67 = arith.constant 0 : index
    %c1_68 = arith.constant 1 : index
    %c0_69 = arith.constant 0 : index
    %c0_70 = arith.constant 0 : index
    %94 = vector.load %arg7[%c0_67, %c1_68, %c0_69, %c0_70] : memref<1x8x8x4xbf16, #tpu.memory_space<vmem>>, vector<1x1x8x4xbf16>
    %95 = vector.shape_cast %94 : vector<1x1x8x4xbf16> to vector<8x4xbf16>
    %96 = vector.shape_cast %93 : vector<8x4xbf16> to vector<1x1x8x4xbf16>
    tpu.vector_store %arg7[%c0_67, %c1_68, %c0_69, %c0_70], %96 {strides = array<i32>} : memref<1x8x8x4xbf16, #tpu.memory_space<vmem>>, vector<1x1x8x4xbf16>,
    %97 = vector.extract_strided_slice %6 {offsets = [0, 72], sizes = [8, 4], strides = [1, 1]} : vector<8x96xf32> to vector<8x4xf32>
    %98 = arith.truncf %97 : vector<8x4xf32> to vector<8x4xbf16>
    %c0_71 = arith.constant 0 : index
    %c2_72 = arith.constant 2 : index
    %c0_73 = arith.constant 0 : index
    %c0_74 = arith.constant 0 : index
    %99 = vector.load %arg7[%c0_71, %c2_72, %c0_73, %c0_74] : memref<1x8x8x4xbf16, #tpu.memory_space<vmem>>, vector<1x1x8x4xbf16>
    %100 = vector.shape_cast %99 : vector<1x1x8x4xbf16> to vector<8x4xbf16>
    %101 = vector.shape_cast %98 : vector<8x4xbf16> to vector<1x1x8x4xbf16>
    tpu.vector_store %arg7[%c0_71, %c2_72, %c0_73, %c0_74], %101 {strides = array<i32>} : memref<1x8x8x4xbf16, #tpu.memory_space<vmem>>, vector<1x1x8x4xbf16>,
    %102 = vector.extract_strided_slice %6 {offsets = [0, 76], sizes = [8, 4], strides = [1, 1]} : vector<8x96xf32> to vector<8x4xf32>
    %103 = arith.truncf %102 : vector<8x4xf32> to vector<8x4xbf16>
    %c0_75 = arith.constant 0 : index
    %c3_76 = arith.constant 3 : index
    %c0_77 = arith.constant 0 : index
    %c0_78 = arith.constant 0 : index
    %104 = vector.load %arg7[%c0_75, %c3_76, %c0_77, %c0_78] : memref<1x8x8x4xbf16, #tpu.memory_space<vmem>>, vector<1x1x8x4xbf16>
    %105 = vector.shape_cast %104 : vector<1x1x8x4xbf16> to vector<8x4xbf16>
    %106 = vector.shape_cast %103 : vector<8x4xbf16> to vector<1x1x8x4xbf16>
    tpu.vector_store %arg7[%c0_75, %c3_76, %c0_77, %c0_78], %106 {strides = array<i32>} : memref<1x8x8x4xbf16, #tpu.memory_space<vmem>>, vector<1x1x8x4xbf16>,
    %107 = vector.extract_strided_slice %6 {offsets = [0, 80], sizes = [8, 4], strides = [1, 1]} : vector<8x96xf32> to vector<8x4xf32>
    %108 = arith.truncf %107 : vector<8x4xf32> to vector<8x4xbf16>
    %c0_79 = arith.constant 0 : index
    %c4_80 = arith.constant 4 : index
    %c0_81 = arith.constant 0 : index
    %c0_82 = arith.constant 0 : index
    %109 = vector.load %arg7[%c0_79, %c4_80, %c0_81, %c0_82] : memref<1x8x8x4xbf16, #tpu.memory_space<vmem>>, vector<1x1x8x4xbf16>
    %110 = vector.shape_cast %109 : vector<1x1x8x4xbf16> to vector<8x4xbf16>
    %111 = vector.shape_cast %108 : vector<8x4xbf16> to vector<1x1x8x4xbf16>
    tpu.vector_store %arg7[%c0_79, %c4_80, %c0_81, %c0_82], %111 {strides = array<i32>} : memref<1x8x8x4xbf16, #tpu.memory_space<vmem>>, vector<1x1x8x4xbf16>,
    %112 = vector.extract_strided_slice %6 {offsets = [0, 84], sizes = [8, 4], strides = [1, 1]} : vector<8x96xf32> to vector<8x4xf32>
    %113 = arith.truncf %112 : vector<8x4xf32> to vector<8x4xbf16>
    %c0_83 = arith.constant 0 : index
    %c5_84 = arith.constant 5 : index
    %c0_85 = arith.constant 0 : index
    %c0_86 = arith.constant 0 : index
    %114 = vector.load %arg7[%c0_83, %c5_84, %c0_85, %c0_86] : memref<1x8x8x4xbf16, #tpu.memory_space<vmem>>, vector<1x1x8x4xbf16>
    %115 = vector.shape_cast %114 : vector<1x1x8x4xbf16> to vector<8x4xbf16>
    %116 = vector.shape_cast %113 : vector<8x4xbf16> to vector<1x1x8x4xbf16>
    tpu.vector_store %arg7[%c0_83, %c5_84, %c0_85, %c0_86], %116 {strides = array<i32>} : memref<1x8x8x4xbf16, #tpu.memory_space<vmem>>, vector<1x1x8x4xbf16>,
    %117 = vector.extract_strided_slice %6 {offsets = [0, 88], sizes = [8, 4], strides = [1, 1]} : vector<8x96xf32> to vector<8x4xf32>
    %118 = arith.truncf %117 : vector<8x4xf32> to vector<8x4xbf16>
    %c0_87 = arith.constant 0 : index
    %c6_88 = arith.constant 6 : index
    %c0_89 = arith.constant 0 : index
    %c0_90 = arith.constant 0 : index
    %119 = vector.load %arg7[%c0_87, %c6_88, %c0_89, %c0_90] : memref<1x8x8x4xbf16, #tpu.memory_space<vmem>>, vector<1x1x8x4xbf16>
    %120 = vector.shape_cast %119 : vector<1x1x8x4xbf16> to vector<8x4xbf16>
    %121 = vector.shape_cast %118 : vector<8x4xbf16> to vector<1x1x8x4xbf16>
    tpu.vector_store %arg7[%c0_87, %c6_88, %c0_89, %c0_90], %121 {strides = array<i32>} : memref<1x8x8x4xbf16, #tpu.memory_space<vmem>>, vector<1x1x8x4xbf16>,
    %122 = vector.extract_strided_slice %6 {offsets = [0, 92], sizes = [8, 4], strides = [1, 1]} : vector<8x96xf32> to vector<8x4xf32>
    %123 = arith.truncf %122 : vector<8x4xf32> to vector<8x4xbf16>
    %c0_91 = arith.constant 0 : index
    %c7_92 = arith.constant 7 : index
    %c0_93 = arith.constant 0 : index
    %c0_94 = arith.constant 0 : index
    %124 = vector.load %arg7[%c0_91, %c7_92, %c0_93, %c0_94] : memref<1x8x8x4xbf16, #tpu.memory_space<vmem>>, vector<1x1x8x4xbf16>
    %125 = vector.shape_cast %124 : vector<1x1x8x4xbf16> to vector<8x4xbf16>
    %126 = vector.shape_cast %123 : vector<8x4xbf16> to vector<1x1x8x4xbf16>
    tpu.vector_store %arg7[%c0_91, %c7_92, %c0_93, %c0_94], %126 {strides = array<i32>} : memref<1x8x8x4xbf16, #tpu.memory_space<vmem>>, vector<1x1x8x4xbf16>,
    return
  }
  func.func @transform_0(%arg0: i32, %arg1: i32) -> (i32, i32, i32) {
    %c0_i32 = arith.constant 0 : i32
    %c0_i32_0 = arith.constant 0 : i32
    return %arg0, %arg1, %c0_i32 : i32, i32, i32
  }
  func.func @transform_1(%arg0: i32, %arg1: i32) -> (i32, i32) {
    %c0_i32 = arith.constant 0 : i32
    %c0_i32_0 = arith.constant 0 : i32
    %c0_i32_1 = arith.constant 0 : i32
    return %c0_i32, %c0_i32_0 : i32, i32
  }
  func.func @transform_2(%arg0: i32, %arg1: i32) -> (i32, i32) {
    %c0_i32 = arith.constant 0 : i32
    %c0_i32_0 = arith.constant 0 : i32
    %c0_i32_1 = arith.constant 0 : i32
    return %c0_i32, %c0_i32_0 : i32, i32
  }
  func.func @transform_3(%arg0: i32, %arg1: i32) -> (i32, i32, i32, i32) {
    %c0_i32 = arith.constant 0 : i32
    %c0_i32_0 = arith.constant 0 : i32
    %c0_i32_1 = arith.constant 0 : i32
    return %arg0, %c0_i32, %arg1, %c0_i32_0 : i32, i32, i32, i32
  }
  func.func @transform_4(%arg0: i32, %arg1: i32) -> (i32, i32, i32, i32) {
    %c0_i32 = arith.constant 0 : i32
    %c0_i32_0 = arith.constant 0 : i32
    %c0_i32_1 = arith.constant 0 : i32
    return %arg0, %c0_i32, %arg1, %c0_i32_0 : i32, i32, i32, i32
  }
  func.func @transform_5(%arg0: i32, %arg1: i32) -> (i32, i32, i32, i32) {
    %c0_i32 = arith.constant 0 : i32
    %c0_i32_0 = arith.constant 0 : i32
    %c0_i32_1 = arith.constant 0 : i32
    return %arg0, %c0_i32, %arg1, %c0_i32_0 : i32, i32, i32, i32
  }
}

</mosaic_0001>

<bundles_post_ra>
// kernel: tpu_custom_call.1
= control target key start
LH: loop header
LB: loop body
LE: loop exit
PB: predicated region body
PF: predicated region fallthrough
CT: control target
= control target key end

     0   :  { %11 = vsyncpa [#allocation3], 0  ;;  %s1164_s0 = inlined_call_operand.hbm [shape: bf16[2,8,32], index: 0, kind: input, shape index: {}]   ;;  %s1165_s1 = inlined_call_operand.hbm [shape: bf16[32,96], index: 1, kind: input, shape index: {}]   ;;  %s1166_s2 = inlined_call_operand.vmem [shape: f32[1,96], index: 2, kind: input, shape index: {}]   ;;  %s1167_s3 = inlined_call_operand.vmem [shape: bf16[2,8,8,4], index: 3, kind: output, shape index: {0}]   ;;  %s1168_s4 = inlined_call_operand.vmem [shape: bf16[2,8,8,4], index: 4, kind: output, shape index: {1}]   ;;  %s1169_s5 = inlined_call_operand.vmem [shape: bf16[2,8,8,4], index: 5, kind: output, shape index: {2}]  }
   0x1   :  { %13 = vsyncpa [#allocation3 + $0x1], 0 }
   0x2   :  { %14 = vsyncpa [#allocation5], 0  ;;  %s992_s18 = smov 0   ;;  %s994_s19 = smov 0  }
   0x3   :  { %s996_s20 = smov 0   ;;  %s998_s21 = smov 0  }
   0x4   :  { %s1000_s22 = smov 0   ;;  %s1002_s23 = smov 0  }
   0x5 LB: > { %s675_s24 = sadd.s32 4294967295, %s934_s23   ;;  %p677_p0 = scmp.ge.s32.totalorder %s934_s23, 1  ;;  %s934_s23 = sphi %s1002_s23, %s20_s23   ;;  %s930_s22 = sphi %s1000_s22, %s1178_s22   ;;  %s926_s21 = sphi %s998_s21, %s1177_s21   ;;  %s922_s20 = sphi %s996_s20, %s1176_s20   ;;  %s918_s19 = sphi %s994_s19, %s1175_s19   ;;  %s914_s18 = sphi %s992_s18, %s1174_s18  }
   0x6   : > { %p1024_p1 = scmp.eq.s32.totalorder %s675_s24, 0  ;;  %p191_p2 = scmp.lt.s32.totalorder %s934_s23, 3 }
   0x7   : > { %s202_s28 = sshll.u32 %s1165_s1, 4  ;;  %s936_s30 = smov [#allocation4]   ;;  %s203_s28 = int_to_ptr.hbm [resolvable:$true] %s202_s28 }
   0x8   : > { %p1032_p3 = pnand %p677_p0, %p191_p2  ;;  %s204_s6 = sshll.u32 %s936_s30, 4  ;;  %s205_s6 = int_to_ptr.vmem [resolvable:$true] %s204_s6 }
   0x9   : > { %s937_s7 = smov 64   ;;  %s938_s8 = smov 4  }
   0xa   : > { %p734_p4 = pneg %p1032_p3  ;;  %s32_s9 = sadd.s32 1, %s930_s22 }
   0xb   : > { %p34_p6 = scmp.ge.s32.totalorder %s32_s9, 2  ;;  %p48_p7 = scmp.ne.s32.totalorder %s922_s20, %s918_s19 }
   0xc   : > { %p735_p5 = pnand %p734_p4, %p1024_p1  ;;  %p49_p8 = scmp.eq.s32.totalorder %s934_s23, 0 }
   0xd   : > { %s1180_s9 = smov (%p34_p6, %s32_s9), 0  ;;  %s41_s10 = sadd.s32 1, %s922_s20 }
   0xe   : > { %737 = dma.hbm_to_vmem [thread:$0]  (!%p735_p5), %s203_s28, 256, %s205_s6, [#allocation5], %s937_s7, %s937_s7, %s938_s8  }
   0xf   : > { %p54_p9 = scmp.ne.s32.totalorder %s918_s19, %s914_s18  ;;  %s36_s11 = ssub.s32 %s930_s22, %s1180_s9 }
  0x10   : > { %p1051_p10 = por %p49_p8, %p48_p7  ;;  %p39_p11 = scmp.eq.s32.totalorder %s36_s11, 0 }
  0x11   : > { %p1057_p12 = por %p1024_p1, %p54_p9  ;;  %s221_s14 = sand.u32 1, %s922_s20  }
  0x12   : > { %s681_s15 = sshll.u32 %s930_s22, 2  ;;  %p743_p13 = scmp.lt.s32.totalorder %s934_s23, 2 }
  0x13   : > { %s1064_s16 = scalar_select %p39_p11, %s922_s20, %s41_s10  }
  0x14   : > { %s680_s17 = sshll.u32 %s221_s14, 2  ;;  %s230_s26 = scalar_lea.hbm %s1164_s0, %s681_s15 }
  0x15   : > { %s232_s27 = sshll.u32 %s230_s26, 4  ;;  %s225_s28 = scalar_lea.vmem [#allocation2], %s680_s17  ;;  %s233_s27 = int_to_ptr.hbm [resolvable:$true] %s232_s27 }
  0x16   : > { %s234_s30 = sshll.u32 %s225_s28, 4  ;;  %p739_p0 = pnand %p743_p13, %p1051_p10  ;;  %s235_s30 = int_to_ptr.vmem [resolvable:$true] %s234_s30 }
  0x17   : > { %s222_s6 = scalar_lea.sflag [#allocation3], %s221_s14  ;;  %243 = sbr.rel (%p1032_p3) target bundleno = 342 (0x156), region = 32 }
  0x18   : > { %741 = dma.hbm_to_vmem [thread:$0]  (!%p739_p0), %s233_s27, 64, %s235_s30, %s222_s6  }
  0x19   : > { %s245_s7 = sand.u32 (!%p1032_p3), 1, %s918_s19  }
  0x1a   : > { %s683_s8 = sshll.u32 (!%p1032_p3), %s245_s7, 2  ;;  %s246_s10 = scalar_lea.sflag (!%p1032_p3), [#allocation3], %s245_s7 }
  0x1b   : > { %s249_s11 = scalar_lea.vmem (!%p1032_p3), [#allocation2], %s683_s8 }
  0x1c   : > { %905 = dma.done.wait (%p1057_p12), %s246_s10, 64  }
  0x1d   : > { %907 = vsyncadd (%p1057_p12), %s246_s10, 4294967232 }
  0x1e   : > { %909 = dma.done.wait (%p1024_p1), [#allocation5], 256  }
  0x1f   : > { %911 = vsyncadd (%p1024_p1), [#allocation5], 4294967040  ;;  %v727_v0 = vld [vmem:[#allocation4 + $0x8] sm:$0xff]  ;;  %v726_v1 = vld [vmem:[#allocation4] sm:$0xff]  ;;  %vm347_vm0 = vcmask 261120   ;;  %p301_p2 = scmp.lt.s32.totalorder %s926_s21, 1 }
  0x20   : > { %357 = vmatpush.bf16.msra.mxu0 %v727_v0  ;;  %v326_v2 = vld [vmem:[%s249_s11] sm:$0xf]  ;;  %vm365_vm1 = vcmask 27648   ;;  %s939_s17 = smov 108   ;;  %s940_s24 = smov 116  }
  0x21   : > { %s1182_s21 = smov (!%p301_p2, %s926_s21), 1  ;;  %v819_v3 = vld [vmem:[%s1166_s2] ss:$0 sm:$0xff]  ;;  %s941_s18 = smov 124  }
  0x22   : > { %s1088_s13 = sshll.u32 %s1182_s21, 5  ;;  %s942_s21 = smov 104  }
  0x23   : > { %s1094_s15 = scalar_lea.vmem %s1167_s3, %s1088_s13  ;;  %s943_s26 = smov 112  }
  0x24   : > { %358 = vmatpush.bf16.msra.mxu0 %v726_v1  ;;  %s944_s27 = smov 120   ;;  %s945_s28 = smov 92  }
  0x25   : > { %s946_s30 = smov 96   ;;  %s947_s6 = smov 100  }
  0x26   : > { %s948_s7 = smov 80   ;;  %s949_s8 = smov 84  }
  0x27   : > { %699 = vmatmul.msk.bf16.vlgmr.msra.gmra.mxu0 %vm347_vm0, %v326_v2  ;;  %s950_s10 = smov 88   ;;  %s951_s11 = smov 68  }
  0x28   : > { %s952_s29 = smov 72   ;;  %s953_s12 = smov 76  }
  0x29   : > { %s954_s25 = smov 56   ;;  %s955_s14 = smov 60  }
  0xa4   : > { %v360_v4 = vpop.f32.mrf.mxu0 }
  0xa5   : > { %v361_v5 = vadd.f32 %v819_v3, %v360_v4 }
  0xa7   : > { %v364_v6 = vpack.c.bf16 %v361_v5, %v361_v5 }
  0xa9   : > { %388 = vrot.lane.b32.xlu2 %v364_v6, %s939_s17  ;;  %378 = vrot.lane.b32.xlu1 %v364_v6, %s940_s24  ;;  %366 = vst.msk [vmem:[%s1094_s15] sm:$0xf] %vm365_vm1, %v364_v6  ;;  %s956_s17 = smov 64   ;;  %s957_s24 = smov 44  }
  0xaa   : > { %368 = vrot.lane.b32.xlu0 %v364_v6, %s941_s18  ;;  %s958_s18 = smov 48  }
  0xac   : > { %v362_v7 = vpop.f32.mrf.mxu0 }
  0xb1   : > { %393 = vrot.lane.b32.xlu2 %v364_v6, %s942_s21  ;;  %383 = vrot.lane.b32.xlu1 %v364_v6, %s943_s26  ;;  %s959_s21 = smov 52   ;;  %s960_s26 = smov 36  }
  0xb2   : > { %373 = vrot.lane.b32.xlu0 %v364_v6, %s944_s27  ;;  %s961_s27 = smov 40  }
  0xb9   : > { %407 = vrot.lane.b32.xlu2 %v364_v6, %s945_s28  ;;  %403 = vrot.lane.b32.xlu1 %v364_v6, %s946_s30 }
  0xba   : > { %398 = vrot.lane.b32.xlu0 %v364_v6, %s947_s6  ;;  %s1106_s6 = scalar_lea.vmem %s1168_s4, %s1088_s13 }
  0xc1   : > { %422 = vrot.lane.b32.xlu2 %v364_v6, %s948_s7  ;;  %417 = vrot.lane.b32.xlu1 %v364_v6, %s949_s8 }
  0xc2   : > { %412 = vrot.lane.b32.xlu0 %v364_v6, %s950_s10  ;;  %s324_s10 = scalar_lea.vmem %s1169_s5, %s1088_s13 }
  0xc9   : > { %437 = vrot.lane.b32.xlu2 %v364_v6, %s951_s11  ;;  %432 = vrot.lane.b32.xlu1 %v364_v6, %s952_s29 }
  0xca   : > { %427 = vrot.lane.b32.xlu0 %v364_v6, %s953_s12 }
  0xd1   : > { %451 = vrot.lane.b32.xlu2 %v364_v6, %s954_s25  ;;  %446 = vrot.lane.b32.xlu1 %v364_v6, %s955_s14 }
  0xd2   : > { %442 = vrot.lane.b32.xlu0 %v364_v6, %s956_s17 }
  0xd9   : > { %466 = vrot.lane.b32.xlu2 %v364_v6, %s957_s24  ;;  %461 = vrot.lane.b32.xlu1 %v364_v6, %s958_s18 }
  0xda   : > { %456 = vrot.lane.b32.xlu0 %v364_v6, %s959_s21 }
  0xe1   : > { %476 = vrot.lane.b32.xlu1 %v364_v6, %s960_s26 }
  0xe2   : > { %471 = vrot.lane.b32.xlu0 %v364_v6, %s961_s27 }
 0x103   : > { %v389_v8 = vpop.permute.xlu2 %388 }
 0x104   : > { %704 = vst.msk [vmem:[%s1094_s15 + $0x14] sm:$0xf] %vm365_vm1, %v389_v8 }
 0x10b   : > { %v394_v9 = vpop.permute.xlu2 %393 }
 0x10c   : > { %705 = vst.msk [vmem:[%s1094_s15 + $0x18] sm:$0xf] %vm365_vm1, %v394_v9 }
 0x113   : > { %v408_v10 = vpop.permute.xlu2 %407 }
 0x114   : > { %707 = vst.msk [vmem:[%s1106_s6 + $0x4] sm:$0xf] %vm365_vm1, %v408_v10 }
 0x11b   : > { %v423_v11 = vpop.permute.xlu2 %422  ;;  %v379_v12 = vpop.permute.xlu1 %378 }
 0x11c   : > { %710 = vst.msk [vmem:[%s1106_s6 + $0x10] sm:$0xf] %vm365_vm1, %v423_v11  ;;  %v369_v13 = vpop.permute.xlu0 %368 }
 0x11d   : > { %702 = vst.msk [vmem:[%s1094_s15 + $0xc] sm:$0xf] %vm365_vm1, %v379_v12 }
 0x11e   : > { %700 = vst.msk [vmem:[%s1094_s15 + $0x4] sm:$0xf] %vm365_vm1, %v369_v13 }
 0x123   : > { %v438_v14 = vpop.permute.xlu2 %437  ;;  %v384_v15 = vpop.permute.xlu1 %383 }
 0x124   : > { %713 = vst.msk [vmem:[%s1106_s6 + $0x1c] sm:$0xf] %vm365_vm1, %v438_v14  ;;  %v374_v16 = vpop.permute.xlu0 %373 }
 0x125   : > { %703 = vst.msk [vmem:[%s1094_s15 + $0x10] sm:$0xf] %vm365_vm1, %v384_v15 }
 0x126   : > { %701 = vst.msk [vmem:[%s1094_s15 + $0x8] sm:$0xf] %vm365_vm1, %v374_v16 }
 0x12b   : > { %v452_v17 = vpop.permute.xlu2 %451  ;;  %v404_v18 = vpop.permute.xlu1 %403 }
 0x12c   : > { %715 = vst.msk [vmem:[%s324_s10 + $0x8] sm:$0xf] %vm365_vm1, %v452_v17  ;;  %v399_v19 = vpop.permute.xlu0 %398 }
 0x12d   : > { %406 = vst.msk [vmem:[%s1106_s6] sm:$0xf] %vm365_vm1, %v404_v18 }
 0x12e   : > { %706 = vst.msk [vmem:[%s1094_s15 + $0x1c] sm:$0xf] %vm365_vm1, %v399_v19 }
 0x133   : > { %v467_v20 = vpop.permute.xlu2 %466  ;;  %v418_v21 = vpop.permute.xlu1 %417 }
 0x134   : > { %718 = vst.msk [vmem:[%s324_s10 + $0x14] sm:$0xf] %vm365_vm1, %v467_v20  ;;  %v413_v22 = vpop.permute.xlu0 %412 }
 0x135   : > { %709 = vst.msk [vmem:[%s1106_s6 + $0xc] sm:$0xf] %vm365_vm1, %v418_v21 }
 0x136   : > { %708 = vst.msk [vmem:[%s1106_s6 + $0x8] sm:$0xf] %vm365_vm1, %v413_v22 }
 0x13b   : > { %v433_v23 = vpop.permute.xlu1 %432 }
 0x13c   : > { %712 = vst.msk [vmem:[%s1106_s6 + $0x18] sm:$0xf] %vm365_vm1, %v433_v23  ;;  %v428_v24 = vpop.permute.xlu0 %427 }
 0x13d   : > { %711 = vst.msk [vmem:[%s1106_s6 + $0x14] sm:$0xf] %vm365_vm1, %v428_v24 }
 0x143   : > { %v447_v25 = vpop.permute.xlu1 %446 }
 0x144   : > { %714 = vst.msk [vmem:[%s324_s10 + $0x4] sm:$0xf] %vm365_vm1, %v447_v25  ;;  %v443_v26 = vpop.permute.xlu0 %442 }
 0x145   : > { %445 = vst.msk [vmem:[%s324_s10] sm:$0xf] %vm365_vm1, %v443_v26 }
 0x14b   : > { %v462_v27 = vpop.permute.xlu1 %461 }
 0x14c   : > { %717 = vst.msk [vmem:[%s324_s10 + $0x10] sm:$0xf] %vm365_vm1, %v462_v27  ;;  %v457_v28 = vpop.permute.xlu0 %456 }
 0x14d   : > { %716 = vst.msk [vmem:[%s324_s10 + $0xc] sm:$0xf] %vm365_vm1, %v457_v28 }
 0x153   : > { %v477_v29 = vpop.permute.xlu1 %476 }
 0x154   : > { %720 = vst.msk [vmem:[%s324_s10 + $0x1c] sm:$0xf] %vm365_vm1, %v477_v29  ;;  %v472_v30 = vpop.permute.xlu0 %471 }
 0x155   : > { %719 = vst.msk [vmem:[%s324_s10 + $0x18] sm:$0xf] %vm365_vm1, %v472_v30 }
 0x156 PF: > { %s20_s23 = sadd.s32 1, %s934_s23   ;;  %s1174_s18 = smov %s918_s19 }
 0x157   : > { %p17_p1 = scmp.ge.s32.totalorder %s20_s23, 4   ;;  %s1175_s19 = smov %s922_s20 }
 0x158   : > { %s1176_s20 = smov %s1064_s16  ;;  %s1177_s21 = smov %s930_s22 }
 0x159   : > { %s1178_s22 = smov %s1180_s9  ;;  %19 = sbr.rel (!%p17_p1) target bundleno = 5 (0x5), region = 121 }
 0x15e   :  { %552 = vsyncpa [#allocation3], 1 }
 0x15f   :  { %554 = vsyncpa [#allocation3 + $0x1], 1 }
 0x160   :  { %555 = vsyncpa [#allocation5], 1 }

</bundles_post_ra>
